<compile_context>
chip_gen: v7x
topology: tpu7x:2x2x1
jax: 0.10.0
libtpu: 0.0.40
codegen_flags: <defaults>
</compile_context>

<pallas_src>
import math
import jax
import jax.numpy as jnp
from jax.experimental import pallas as pl
from jax.experimental.pallas import tpu as pltpu


def _round_up(n, m):
    return ((n + m - 1) // m) * m


def _stacked_nac_kernel(x_ref, w_hat_ref, m_hat_ref, o_ref, act_ref):
    """Grid axis 0 iterates over layers; activation lives in VMEM scratch."""
    l = pl.program_id(0)

    # Gate: W = tanh(W_hat) * sigmoid(M_hat).
    # sigmoid(m) == 0.5*(tanh(0.5*m)+1)  -> two tanh EUP pushes instead of
    # tanh + exp + reciprocal. Done once per layer (not per batch tile).
    w_hat = w_hat_ref[0]
    m_hat = m_hat_ref[0]
    w = jnp.tanh(w_hat) * (0.5 * (jnp.tanh(0.5 * m_hat) + 1.0))

    # Layer 0: seed the resident activation with the (padded) input.
    @pl.when(l == 0)
    def _():
        act_ref[...] = x_ref[...]

    # act <- act @ W   (MXU, f32 accumulate). Activation never leaves VMEM
    # between layers.
    act_ref[...] = jnp.dot(act_ref[...], w, preferred_element_type=jnp.float32)

    # Last layer: single lane-dense (128-multiple) store to the output.
    @pl.when(l == pl.num_programs(0) - 1)
    def _():
        o_ref[...] = act_ref[...].astype(o_ref.dtype)


def _stacked_nac_forward_impl(x, params):
    batch, in_dim = x.shape
    n_layers = len(params)
    out_dim = params[-1][0].shape[1]

    # Pad every feature dim to a common lane-dense size (multiple of 128) and
    # batch to a sublane multiple of 8.
    all_dims = [in_dim] + [w_hat.shape[1] for (w_hat, _) in params]
    d_pad = _round_up(max(all_dims), 128)
    b_pad = _round_up(batch, 8)

    # Stack + zero-pad weights: (L, d_pad, d_pad). Padded entries are 0, and
    # tanh(0)*sigmoid(0) == 0, so the effective padded weight lanes are exactly
    # zero and cannot contaminate downstream layers.
    w_hat_stack = jnp.zeros((n_layers, d_pad, d_pad), jnp.float32)
    m_hat_stack = jnp.zeros((n_layers, d_pad, d_pad), jnp.float32)
    for i, (w_hat, m_hat) in enumerate(params):
        di, do = w_hat.shape
        w_hat_stack = w_hat_stack.at[i, :di, :do].set(w_hat.astype(jnp.float32))
        m_hat_stack = m_hat_stack.at[i, :di, :do].set(m_hat.astype(jnp.float32))

    x_pad = (
        jnp.zeros((b_pad, d_pad), jnp.float32)
        .at[:batch, :in_dim]
        .set(x.astype(jnp.float32))
    )

    y_pad = pl.pallas_call(
        _stacked_nac_kernel,
        out_shape=jax.ShapeDtypeStruct((b_pad, d_pad), x.dtype),
        grid_spec=pltpu.PrefetchScalarGridSpec(
            num_scalar_prefetch=0,
            grid=(n_layers,),
            in_specs=[
                # Padded activation input: same (only) block every layer step.
                pl.BlockSpec((b_pad, d_pad), lambda l: (0, 0)),
                # Per-layer weights streamed along the layer grid axis
                # (auto double-buffered by the Pallas pipeline).
                pl.BlockSpec((1, d_pad, d_pad), lambda l: (l, 0, 0)),
                pl.BlockSpec((1, d_pad, d_pad), lambda l: (l, 0, 0)),
            ],
            # Same output block across the layer axis -> resident, written once
            # on the final layer (lane-dense, unmasked stores).
            out_specs=pl.BlockSpec((b_pad, d_pad), lambda l: (0, 0)),
            scratch_shapes=[pltpu.VMEM((b_pad, d_pad), jnp.float32)],
        ),
        compiler_params=pltpu.CompilerParams(
            # Layer axis is a sequential chain -> "arbitrary". A "parallel"
            # batch-tile axis would be added here for v7x at larger batch.
            dimension_semantics=("arbitrary",),
        ),
    )(x_pad, w_hat_stack, m_hat_stack)

    return y_pad[:batch, :out_dim].astype(x.dtype)


# One jitted executable: padding + fused kernel + output slice.
stacked_nac_forward = jax.jit(_stacked_nac_forward_impl)


def xavier_uniform(key, shape, dtype=jnp.float32):
    """Deterministic xavier_uniform_ equivalent (gain=1)."""
    fan_in, fan_out = shape
    bound = math.sqrt(6.0 / (fan_in + fan_out))
    return jax.random.uniform(key, shape, dtype=dtype, minval=-bound, maxval=bound)


def init_stacked_nac_params(key, n_layers, in_dim, out_dim, hidden_dim):
    params = []
    for i in range(n_layers):
        d_in = in_dim if i == 0 else hidden_dim
        d_out = out_dim if i == n_layers - 1 else hidden_dim
        key, kw, km = jax.random.split(key, 3)
        params.append(
            (xavier_uniform(kw, (d_in, d_out)), xavier_uniform(km, (d_in, d_out)))
        )
    return params


def stacked_nac_reference(x, params):
    # Pure-JAX reference matching the PyTorch module exactly.
    for (w_hat, m_hat) in params:
        w = jnp.tanh(w_hat) * jax.nn.sigmoid(m_hat)
        x = x @ w
    return x


if __name__ == "__main__":
    key = jax.random.PRNGKey(0)
    k_x, k_p = jax.random.split(key)

    n_layers, in_dim, hidden_dim, out_dim = 3, 32, 32, 16
    batch = 8

    x = jax.random.normal(k_x, (batch, in_dim), dtype=jnp.float32)
    params = init_stacked_nac_params(k_p, n_layers, in_dim, out_dim, hidden_dim)

    y = stacked_nac_forward(x, params)
    y = jax.block_until_ready(y)

    y_ref = stacked_nac_reference(x, params)
    assert y.shape == (batch, out_dim)
    # Tolerance covers the tanh-based sigmoid identity + MXU f32 accumulation.
    assert jnp.allclose(y, y_ref, atol=1e-4, rtol=1e-4)

    print("KERNEL_OK")
</pallas_src>

<mosaic_0001>
module attributes {stable_mosaic.version = 11 : i64} {
  func.func @_stacked_nac_kernel(%arg0: i32, %arg1: memref<8x128xf32, #tpu.memory_space<vmem>>, %arg2: memref<1x128x128xf32, #tpu.memory_space<vmem>>, %arg3: memref<1x128x128xf32, #tpu.memory_space<vmem>>, %arg4: memref<8x128xf32, #tpu.memory_space<vmem>>, %arg5: memref<8x128xf32, #tpu.memory_space<vmem>>) attributes {dimension_semantics = [#tpu.dimension_semantics<arbitrary>], iteration_bounds = array<i64: 3>, scalar_prefetch = 0 : i64, scratch_operands = 1 : i64, tpu.core_type = #tpu.core_type<tc>, window_params = [{pipeline_mode = #tpu.pipeline_mode<synchronous>, transform_indices = @transform_0, window_bounds = array<i64: 8, 128>}, {transform_indices = @transform_1, window_bounds = array<i64: 1, 128, 128>}, {transform_indices = @transform_2, window_bounds = array<i64: 1, 128, 128>}, {pipeline_mode = #tpu.pipeline_mode<synchronous>, transform_indices = @transform_3, window_bounds = array<i64: 8, 128>}]} {
    %c0 = arith.constant 0 : index
    %c0_0 = arith.constant 0 : index
    %c0_1 = arith.constant 0 : index
    %0 = vector.load %arg2[%c0, %c0_0, %c0_1] : memref<1x128x128xf32, #tpu.memory_space<vmem>>, vector<1x128x128xf32>
    %1 = vector.shape_cast %0 : vector<1x128x128xf32> to vector<128x128xf32>
    %c0_2 = arith.constant 0 : index
    %c0_3 = arith.constant 0 : index
    %c0_4 = arith.constant 0 : index
    %2 = vector.load %arg3[%c0_2, %c0_3, %c0_4] : memref<1x128x128xf32, #tpu.memory_space<vmem>>, vector<1x128x128xf32>
    %3 = vector.shape_cast %2 : vector<1x128x128xf32> to vector<128x128xf32>
    %4 = math.tanh %1 : vector<128x128xf32>
    %cst = arith.constant 5.000000e-01 : f32
    %5 = vector.broadcast %cst : f32 to vector<128x128xf32>
    %6 = arith.mulf %5, %3 : vector<128x128xf32>
    %7 = math.tanh %6 : vector<128x128xf32>
    %cst_5 = arith.constant 1.000000e+00 : f32
    %8 = vector.broadcast %cst_5 : f32 to vector<128x128xf32>
    %9 = arith.addf %7, %8 : vector<128x128xf32>
    %cst_6 = arith.constant 5.000000e-01 : f32
    %10 = vector.broadcast %cst_6 : f32 to vector<128x128xf32>
    %11 = arith.mulf %10, %9 : vector<128x128xf32>
    %12 = arith.mulf %4, %11 : vector<128x128xf32>
    %c0_i32 = arith.constant 0 : i32
    %13 = arith.cmpi eq, %arg0, %c0_i32 : i32
    %14 = arith.extui %13 : i1 to i32
    %c0_i32_7 = arith.constant 0 : i32
    %15 = arith.cmpi ne, %14, %c0_i32_7 : i32
    scf.if %15 {
      %c0_14 = arith.constant 0 : index
      %c0_15 = arith.constant 0 : index
      %22 = vector.load %arg1[%c0_14, %c0_15] : memref<8x128xf32, #tpu.memory_space<vmem>>, vector<8x128xf32>
      %c0_16 = arith.constant 0 : index
      %c0_17 = arith.constant 0 : index
      %23 = vector.load %arg5[%c0_16, %c0_17] : memref<8x128xf32, #tpu.memory_space<vmem>>, vector<8x128xf32>
      tpu.vector_store %arg5[%c0_16, %c0_17], %22 {strides = array<i32>} : memref<8x128xf32, #tpu.memory_space<vmem>>, vector<8x128xf32>,
    } else {
    }
    %c0_8 = arith.constant 0 : index
    %c0_9 = arith.constant 0 : index
    %16 = vector.load %arg5[%c0_8, %c0_9] : memref<8x128xf32, #tpu.memory_space<vmem>>, vector<8x128xf32>
    %cst_10 = arith.constant dense<0.000000e+00> : vector<8x128xf32>
    %17 = tpu.matmul %16, %12, %cst_10 {dimension_numbers = #tpu.dot_dimension_numbers<[1], [0], [0], [1], [0, 0, 1, 1], [], []>} : vector<8x128xf32>, vector<128x128xf32>, vector<8x128xf32> -> vector<8x128xf32>
    %c0_11 = arith.constant 0 : index
    %c0_12 = arith.constant 0 : index
    %18 = vector.load %arg5[%c0_11, %c0_12] : memref<8x128xf32, #tpu.memory_space<vmem>>, vector<8x128xf32>
    tpu.vector_store %arg5[%c0_11, %c0_12], %17 {strides = array<i32>} : memref<8x128xf32, #tpu.memory_space<vmem>>, vector<8x128xf32>,
    %c2_i32 = arith.constant 2 : i32
    %19 = arith.cmpi eq, %arg0, %c2_i32 : i32
    %20 = arith.extui %19 : i1 to i32
    %c0_i32_13 = arith.constant 0 : i32
    %21 = arith.cmpi ne, %20, %c0_i32_13 : i32
    scf.if %21 {
      %c0_14 = arith.constant 0 : index
      %c0_15 = arith.constant 0 : index
      %22 = vector.load %arg5[%c0_14, %c0_15] : memref<8x128xf32, #tpu.memory_space<vmem>>, vector<8x128xf32>
      %c0_16 = arith.constant 0 : index
      %c0_17 = arith.constant 0 : index
      %23 = vector.load %arg4[%c0_16, %c0_17] : memref<8x128xf32, #tpu.memory_space<vmem>>, vector<8x128xf32>
      tpu.vector_store %arg4[%c0_16, %c0_17], %22 {strides = array<i32>} : memref<8x128xf32, #tpu.memory_space<vmem>>, vector<8x128xf32>,
    } else {
    }
    return
  }
  func.func @transform_0(%arg0: i32) -> (i32, i32) {
    %c0_i32 = arith.constant 0 : i32
    %c0_i32_0 = arith.constant 0 : i32
    %c0_i32_1 = arith.constant 0 : i32
    return %c0_i32, %c0_i32_0 : i32, i32
  }
  func.func @transform_1(%arg0: i32) -> (i32, i32, i32) {
    %c0_i32 = arith.constant 0 : i32
    %c0_i32_0 = arith.constant 0 : i32
    %c0_i32_1 = arith.constant 0 : i32
    return %arg0, %c0_i32, %c0_i32_0 : i32, i32, i32
  }
  func.func @transform_2(%arg0: i32) -> (i32, i32, i32) {
    %c0_i32 = arith.constant 0 : i32
    %c0_i32_0 = arith.constant 0 : i32
    %c0_i32_1 = arith.constant 0 : i32
    return %arg0, %c0_i32, %c0_i32_0 : i32, i32, i32
  }
  func.func @transform_3(%arg0: i32) -> (i32, i32) {
    %c0_i32 = arith.constant 0 : i32
    %c0_i32_0 = arith.constant 0 : i32
    %c0_i32_1 = arith.constant 0 : i32
    return %c0_i32, %c0_i32_0 : i32, i32
  }
}

</mosaic_0001>

<bundles_post_ra>
// kernel: _stacked_nac_forward_impl.1
= control target key start
LH: loop header
LB: loop body
LE: loop exit
PB: predicated region body
PF: predicated region fallthrough
CT: control target
= control target key end

     0   :  { %8 = vsyncpa [#allocation4], 0  ;;  %s683_s12 = smov 0   ;;  %s810_s0 = inlined_call_operand.vmem [shape: f32[8,128], index: 0, kind: input, shape index: {}]   ;;  %s811_s1 = inlined_call_operand.vmem [shape: f32[3,128,128], index: 1, kind: input, shape index: {}]   ;;  %s812_s2 = inlined_call_operand.vmem [shape: f32[3,128,128], index: 2, kind: input, shape index: {}]   ;;  %s813_s3 = inlined_call_operand.hbm [shape: f32[8,128], index: 3, kind: output, shape index: {}]  }
   0x1 LB: > { %s689_s13 = sadd.s32 4294967295, %s657_s12   ;;  %p450_p0 = scmp.ge.s32.totalorder %s657_s12, 1  ;;  %s657_s12 = sphi %s683_s12, %s14_s12  }
   0x2   : > { %p143_p1 = scmp.lt.s32.totalorder %s657_s12, 4 }
   0x4   : > { %p144_p2 = pnand %p450_p0, %p143_p1 }
   0x5   : > { %p167_p3 = scmp.lt.s32.totalorder (!%p144_p2), %s689_s13, 2  ;;  %p455_p4 = scmp.ne.s32.totalorder (!%p144_p2), %s689_s13, 0 }
   0x6   : > { %147 = sbr.rel (%p144_p2) target bundleno = 342 (0x156), region = 32 }
   0xd   : > { %s168_s14 = scalar_select %p167_p3, %s689_s13, 2 }
   0xf   : > { %s461_s15 = sshll.u32 %s168_s14, 7 }
  0x10   : > { %s698_s18 = scalar_lea.vmem %s811_s1, %s461_s15  ;;  %s710_s21 = scalar_lea.vmem %s812_s2, %s461_s15 }
  0x11   : > { %v177_v0 = vld [vmem:[%s698_s18] sm:$0xff]  ;;  %v178_v1 = vld [vmem:[%s698_s18 + $0x8] sm:$0xff]  ;;  %v179_v2 = vld [vmem:[%s698_s18 + $0x10] sm:$0xff] }
  0x12   : > { %v180_v3 = vld [vmem:[%s698_s18 + $0x18] sm:$0xff]  ;;  %557 = vtanh.f32 %v177_v0  ;;  %v181_v4 = vld [vmem:[%s698_s18 + $0x20] sm:$0xff]  ;;  %v182_v5 = vld [vmem:[%s698_s18 + $0x28] sm:$0xff] }
  0x13   : > { %559 = vtanh.f32 %v178_v1  ;;  %v183_v6 = vld [vmem:[%s698_s18 + $0x30] sm:$0xff]  ;;  %v184_v7 = vld [vmem:[%s698_s18 + $0x38] sm:$0xff]  ;;  %v185_v8 = vld [vmem:[%s698_s18 + $0x40] sm:$0xff] }
  0x14   : > { %561 = vtanh.f32 %v179_v2  ;;  %v186_v9 = vld [vmem:[%s698_s18 + $0x48] sm:$0xff]  ;;  %v187_v10 = vld [vmem:[%s698_s18 + $0x50] sm:$0xff]  ;;  %v193_v11 = vld [vmem:[%s710_s21] sm:$0xff] }
  0x15   : > { %563 = vtanh.f32 %v180_v3  ;;  %v188_v12 = vld [vmem:[%s698_s18 + $0x58] sm:$0xff]  ;;  %v194_v13 = vld [vmem:[%s710_s21 + $0x8] sm:$0xff]  ;;  %v189_v14 = vld [vmem:[%s698_s18 + $0x60] sm:$0xff]  ;;  %v225_v19 = vmul.f32 0.5, %v193_v11 }
  0x16   : > { %565 = vtanh.f32 %v181_v4  ;;  %v195_v15 = vld [vmem:[%s710_s21 + $0x10] sm:$0xff]  ;;  %v190_v17 = vld [vmem:[%s698_s18 + $0x68] sm:$0xff]  ;;  %v196_v18 = vld [vmem:[%s710_s21 + $0x18] sm:$0xff]  ;;  %v226_v22 = vmul.f32 0.5, %v194_v13 }
  0x17   : > { %567 = vtanh.f32 %v182_v5  ;;  %v197_v21 = vld [vmem:[%s710_s21 + $0x20] sm:$0xff]  ;;  %v198_v24 = vld [vmem:[%s710_s21 + $0x28] sm:$0xff]  ;;  %v227_v25 = vmul.f32 0.5, %v195_v15  ;;  %v199_v27 = vld [vmem:[%s710_s21 + $0x30] sm:$0xff]  ;;  %v228_v28 = vmul.f32 0.5, %v196_v18 }
  0x18   : > { %569 = vtanh.f32 %v183_v6  ;;  %v200_v30 = vld [vmem:[%s710_s21 + $0x38] sm:$0xff]  ;;  %v229_v31 = vmul.f32 0.5, %v197_v21  ;;  %v201_v33 = vld [vmem:[%s710_s21 + $0x40] sm:$0xff]  ;;  %v230_v34 = vmul.f32 0.5, %v198_v24  ;;  %v202_v36 = vld [vmem:[%s710_s21 + $0x48] sm:$0xff]  ;;  %v231_v37 = vmul.f32 0.5, %v199_v27 }
  0x19   : > { %571 = vtanh.f32 %v184_v7  ;;  %v203_v39 = vld [vmem:[%s710_s21 + $0x50] sm:$0xff]  ;;  %v232_v40 = vmul.f32 0.5, %v200_v30  ;;  %v204_v42 = vld [vmem:[%s710_s21 + $0x58] sm:$0xff]  ;;  %v233_v43 = vmul.f32 0.5, %v201_v33  ;;  %v205_v45 = vld [vmem:[%s710_s21 + $0x60] sm:$0xff]  ;;  %v234_v46 = vmul.f32 0.5, %v202_v36 }
  0x1a   : > { %573 = vtanh.f32 %v185_v8  ;;  %v206_v48 = vld [vmem:[%s710_s21 + $0x68] sm:$0xff]  ;;  %v235_v49 = vmul.f32 0.5, %v203_v39  ;;  %v207_v51 = vld [vmem:[%s710_s21 + $0x70] sm:$0xff]  ;;  %v236_v52 = vmul.f32 0.5, %v204_v42  ;;  %v208_v54 = vld [vmem:[%s710_s21 + $0x78] sm:$0xff]  ;;  %v237_v55 = vmul.f32 0.5, %v205_v45 }
  0x1b   : > { %575 = vtanh.f32 %v186_v9  ;;  %v238_v57 = vmul.f32 0.5, %v206_v48  ;;  %v239_v59 = vmul.f32 0.5, %v207_v51  ;;  %v240_v61 = vmul.f32 0.5, %v208_v54  ;;  %v191_v2 = vld [vmem:[%s698_s18 + $0x70] sm:$0xff]  ;;  %v192_v6 = vld [vmem:[%s698_s18 + $0x78] sm:$0xff] }
  0x1c   : > { %v721_v16 = vpop.eup %557  ;;  %577 = vtanh.f32 %v187_v10 }
  0x1d   : > { %v725_v20 = vpop.eup %559  ;;  %579 = vtanh.f32 %v188_v12 }
  0x1e   : > { %v728_v23 = vpop.eup %561  ;;  %581 = vtanh.f32 %v189_v14 }
  0x1f   : > { %v731_v26 = vpop.eup %563  ;;  %583 = vtanh.f32 %v190_v17 }
  0x20   : > { %v734_v29 = vpop.eup %565  ;;  %585 = vtanh.f32 %v225_v19 }
  0x21   : > { %v737_v32 = vpop.eup %567  ;;  %587 = vtanh.f32 %v226_v22 }
  0x22   : > { %v740_v35 = vpop.eup %569  ;;  %589 = vtanh.f32 %v227_v25 }
  0x23   : > { %v743_v38 = vpop.eup %571  ;;  %591 = vtanh.f32 %v228_v28 }
  0x24   : > { %v746_v41 = vpop.eup %573  ;;  %593 = vtanh.f32 %v229_v31 }
  0x25   : > { %v749_v44 = vpop.eup %575  ;;  %595 = vtanh.f32 %v230_v34 }
  0x26   : > { %v752_v47 = vpop.eup %577  ;;  %597 = vtanh.f32 %v231_v37 }
  0x27   : > { %v755_v50 = vpop.eup %579  ;;  %599 = vtanh.f32 %v232_v40 }
  0x28   : > { %v758_v53 = vpop.eup %581  ;;  %601 = vtanh.f32 %v233_v43 }
  0x29   : > { %v761_v56 = vpop.eup %583  ;;  %603 = vtanh.f32 %v234_v46 }
  0x2a   : > { %v586_v58 = vpop.eup %585  ;;  %605 = vtanh.f32 %v235_v49 }
  0x2b   : > { %v588_v60 = vpop.eup %587  ;;  %607 = vtanh.f32 %v236_v52  ;;  %v257_v62 = vadd.f32 1.0, %v586_v58 }
  0x2c   : > { %v590_v63 = vpop.eup %589  ;;  %609 = vtanh.f32 %v237_v55  ;;  %v258_v0 = vadd.f32 1.0, %v588_v60 }
  0x2d   : > { %v592_v1 = vpop.eup %591  ;;  %611 = vtanh.f32 %v238_v57  ;;  %v259_v3 = vadd.f32 1.0, %v590_v63  ;;  %v273_v4 = vmul.f32 0.5, %v257_v62 }
  0x2e   : > { %v594_v5 = vpop.eup %593  ;;  %613 = vtanh.f32 %v239_v59  ;;  %v260_v7 = vadd.f32 1.0, %v592_v1  ;;  %v274_v8 = vmul.f32 0.5, %v258_v0 }
  0x2f   : > { %v596_v9 = vpop.eup %595  ;;  %615 = vtanh.f32 %v240_v61  ;;  %v261_v10 = vadd.f32 1.0, %v594_v5  ;;  %v275_v11 = vmul.f32 0.5, %v259_v3  ;;  %v289_v12 = vmul.f32 %v721_v16, %v273_v4 }
  0x30   : > { %v598_v13 = vpop.eup %597  ;;  %617 = vtanh.f32 %v191_v2  ;;  %v262_v14 = vadd.f32 1.0, %v596_v9  ;;  %v276_v15 = vmul.f32 0.5, %v260_v7  ;;  %v290_v17 = vmul.f32 %v725_v20, %v274_v8 }
  0x31   : > { %v600_v18 = vpop.eup %599  ;;  %619 = vtanh.f32 %v192_v6  ;;  %v263_v19 = vadd.f32 1.0, %v598_v13  ;;  %v277_v21 = vmul.f32 0.5, %v261_v10  ;;  %v291_v22 = vmul.f32 %v728_v23, %v275_v11 }
  0x32   : > { %v602_v24 = vpop.eup %601  ;;  %v264_v25 = vadd.f32 1.0, %v600_v18  ;;  %v278_v27 = vmul.f32 0.5, %v262_v14  ;;  %v292_v28 = vmul.f32 %v731_v26, %v276_v15 }
  0x33   : > { %v604_v30 = vpop.eup %603  ;;  %v265_v31 = vadd.f32 1.0, %v602_v24  ;;  %v279_v16 = vmul.f32 0.5, %v263_v19  ;;  %v293_v33 = vmul.f32 %v734_v29, %v277_v21 }
  0x34   : > { %v606_v34 = vpop.eup %605  ;;  %v266_v36 = vadd.f32 1.0, %v604_v30  ;;  %v280_v37 = vmul.f32 0.5, %v264_v25  ;;  %v294_v20 = vmul.f32 %v737_v32, %v278_v27 }
  0x35   : > { %v608_v39 = vpop.eup %607  ;;  %v267_v40 = vadd.f32 1.0, %v606_v34  ;;  %v281_v42 = vmul.f32 0.5, %v265_v31  ;;  %v295_v23 = vmul.f32 %v740_v35, %v279_v16 }
  0x36   : > { %v610_v43 = vpop.eup %609  ;;  %v268_v45 = vadd.f32 1.0, %v608_v39  ;;  %v282_v46 = vmul.f32 0.5, %v266_v36  ;;  %v296_v26 = vmul.f32 %v743_v38, %v280_v37 }
  0x37   : > { %v612_v48 = vpop.eup %611  ;;  %v269_v49 = vadd.f32 1.0, %v610_v43  ;;  %v283_v51 = vmul.f32 0.5, %v267_v40  ;;  %v297_v29 = vmul.f32 %v746_v41, %v281_v42 }
  0x38   : > { %v614_v52 = vpop.eup %613  ;;  %v270_v54 = vadd.f32 1.0, %v612_v48  ;;  %v284_v55 = vmul.f32 0.5, %v268_v45  ;;  %v298_v32 = vmul.f32 %v749_v44, %v282_v46  ;;  %308 = sbr.rel (%p455_p4) target bundleno = 63 (0x3f), region = 36  ;;  %v309_v44 = vld [vmem:[%s810_s0] sm:$0xff] (!%p455_p4) }
  0x39   : > { %v616_v57 = vpop.eup %615  ;;  %v271_v58 = vadd.f32 1.0, %v614_v52  ;;  %v285_v59 = vmul.f32 0.5, %v269_v49  ;;  %v299_v35 = vmul.f32 %v752_v47, %v283_v51  ;;  %310 = vst [vmem:[#allocation2] sm:$0xff] (!%p455_p4), %v309_v44 }
  0x3a   : > { %v618_v60 = vpop.eup %617  ;;  %v272_v61 = vadd.f32 1.0, %v616_v57  ;;  %v286_v62 = vmul.f32 0.5, %v270_v54  ;;  %v300_v38 = vmul.f32 %v755_v50, %v284_v55 }
  0x3b   : > { %v620_v63 = vpop.eup %619  ;;  %v287_v0 = vmul.f32 0.5, %v271_v58  ;;  %v301_v1 = vmul.f32 %v758_v53, %v285_v59 }
  0x3c   : > { %v288_v41 = vmul.f32 0.5, %v272_v61  ;;  %v302_v2 = vmul.f32 %v761_v56, %v286_v62 }
  0x3d   : > { %v303_v3 = vmul.f32 %v618_v60, %v287_v0 }
  0x3e   : > { %v304_v4 = vmul.f32 %v620_v63, %v288_v41 }
  0x3f PF: > { %v516_v47 = vpack.c.bf16 %v290_v17, %v289_v12  ;;  %v659_v50 = vmov 0.0|0.0   ;;  %v519_v5 = vpack.c.bf16 %v292_v28, %v291_v22  ;;  %vm660_vm0 = vmmov 0   ;;  %p456_p5 = scmp.ne.s32.totalorder %s689_s13, 2 }
  0x40   : > { %515 = vmatprep.subr.bf16.mxu0 %v659_v50  ;;  %v661_v53 = vmov 0.0   ;;  %v522_v56 = vpack.c.bf16 %v294_v20, %v293_v33  ;;  %v525_v6 = vpack.c.bf16 %v296_v26, %v295_v23  ;;  %v528_v7 = vpack.c.bf16 %v298_v32, %v297_v29  ;;  %v311_v11 = vld [vmem:[#allocation2] sm:$0xff] }
  0x41   : > { %517 = vmatpush3.bf16.msra.mxu0 %v516_v47  ;;  %512 = vmatprep.mubr.msk.f32.mxu0 %vm660_vm0, %v661_v53  ;;  %v531_v8 = vpack.c.bf16 %v300_v38, %v299_v35  ;;  %v534_v9 = vpack.c.bf16 %v302_v2, %v301_v1  ;;  %v537_v10 = vpack.c.bf16 %v304_v4, %v303_v3 }
  0x42   : > { %518 = vmatprep.subr.bf16.mxu0 %v659_v50 }
  0x45   : > { %520 = vmatpush3.bf16.msra.mxu0 %v519_v5 }
  0x46   : > { %521 = vmatprep.subr.bf16.mxu0 %v659_v50 }
  0x49   : > { %523 = vmatpush3.bf16.msra.mxu0 %v522_v56 }
  0x4a   : > { %524 = vmatprep.subr.bf16.mxu0 %v659_v50 }
  0x4d   : > { %526 = vmatpush3.bf16.msra.mxu0 %v525_v6 }
  0x4e   : > { %527 = vmatprep.subr.bf16.mxu0 %v659_v50 }
  0x51   : > { %529 = vmatpush3.bf16.msra.mxu0 %v528_v7 }
  0x52   : > { %530 = vmatprep.subr.bf16.mxu0 %v659_v50 }
  0x55   : > { %532 = vmatpush3.bf16.msra.mxu0 %v531_v8 }
  0x56   : > { %533 = vmatprep.subr.bf16.mxu0 %v659_v50 }
  0x59   : > { %535 = vmatpush3.bf16.msra.mxu0 %v534_v9 }
  0x5a   : > { %536 = vmatprep.subr.bf16.mxu0 %v659_v50 }
  0x5d   : > { %538 = vmatpush3.bf16.msra.mxu0 %v537_v10 }
  0x60   : > { %513 = vmatmul.mubr.f32.vlgmr.msra.gmra.mrb[0].mxu0 %v311_v11 }
 0x12e   : > { %386 = sbr.rel (%p456_p5) target bundleno = 317 (0x13d), region = 40 }
 0x133   : > { %v378_v12 = vpop.f32.mrb[0].mxu0 }
 0x134   : > { %382 = vst [vmem:[#allocation2] sm:$0xff] %v378_v12  ;;  %v514_v13 = vpop.f32.mrb[1].mxu0 }
 0x13b   : > { %v387_v14 = vld [vmem:[#allocation2] sm:$0xff] }
 0x13c   : > { %388 = vst [vmem:[#allocation3] sm:$0xff] %v387_v14 }
 0x13d PF: > { %p543_p6 = scmp.eq.s32.totalorder %s689_s13, 2  ;;  %s662_s24 = smov [#allocation3]  }
 0x13e   : > { %s396_s25 = sshll.u32 %s662_s24, 4  ;;  %s397_s25 = int_to_ptr.vmem [resolvable:$true] %s396_s25 }
 0x13f   : > { %s621_s26 = scalar_lea.vmem %s397_s25, 128  ;;  %p628_p10 = scmp.lt.s32.totalorder %s397_s25, %s397_s25 }
 0x140   : > { %p622_p7 = scmp.ne.s32.totalorder %s397_s25, %s621_s26  ;;  %p629_p11 = scmp.lt.s32.totalorder %s621_s26, %s621_s26 }
 0x142   : > { %p623_p8 = pnand %p622_p7, %p543_p6  ;;  %p630_p12 = por %p629_p11, %p628_p10 }
 0x144   : > { %p624_p9 = pneg %p623_p8 }
 0x146   : > { %p631_p13 = pnand %p630_p12, %p624_p9 }
 0x148   : > { %634 = shalt.err (!%p631_p13)
}
 0x149   : > { %s635_s29 = scalar_lea.hbm %s813_s3, 128 }
 0x14a   : > { %p636_p0 = scmp.ne.s32.totalorder %s813_s3, %s635_s29  ;;  %p641_p3 = scmp.lt.u32.totalorder %s635_s29, %s813_s3 }
 0x14c   : > { %p637_p1 = pnand %p636_p0, %p543_p6 }
 0x14e   : > { %p638_p2 = pneg %p637_p1 }
 0x150   : > { %p643_p4 = pnand %p641_p3, %p638_p2 }
 0x152   : > { %646 = shalt.err (!%p643_p4)
}
 0x153   : > { %540 = dma.vmem_to_hbm [thread:$0]  (%p543_p6), %s397_s25, 128, %s813_s3, [#allocation4]  }
 0x154   : > { %652 = dma.done.wait (%p543_p6), [#allocation4], 128  }
 0x155   : > { %654 = vsyncadd (%p543_p6), [#allocation4], 4294967168 }
 0x156 PF: > { %s14_s12 = sadd.s32 1, %s657_s12  }
 0x157   : > { %p11_p5 = scmp.ge.s32.totalorder %s14_s12, 5  }
 0x159   :  { %13 = sbr.rel (!%p11_p5) target bundleno = 1 (0x1), region = 70 }
 0x160   :  { %409 = vsyncpa [#allocation4], 1 }
 0x161   :  { %411 = vsyncpa [#allocation4 + $0x1], 1 }

</bundles_post_ra>
